<compile_context>
chip_gen: v7x
topology: tpu7x:2x2x1
jax: 0.10.0
libtpu: 0.0.40
codegen_flags: <defaults>
</compile_context>

<pallas_src>
import functools

import numpy as np
import jax
import jax.numpy as jnp
from jax.experimental import pallas as pl
from jax.experimental.pallas import tpu as pltpu


def _gaussian_kernel1d(kernel_size: int, sigma: float) -> np.ndarray:
    # Matches torchvision.transforms.functional._get_gaussian_kernel1d.
    half = (kernel_size - 1) * 0.5
    x = np.linspace(-half, half, kernel_size)
    pdf = np.exp(-0.5 * (x / float(sigma)) ** 2)
    return (pdf / pdf.sum()).astype(np.float32)


def _blur_matrix(size: int, kernel_size: int, sigma: float) -> np.ndarray:
    # B[i, j] = weight of input pixel j in blurred output pixel i, with torchvision's
    # 'reflect' padding (edge not repeated) folded into the boundary rows.
    k = _gaussian_kernel1d(kernel_size, sigma)
    pad = kernel_size // 2
    assert kernel_size % 2 == 1 and pad < size, "need odd kernel_size and kernel_size//2 < spatial size"
    B = np.zeros((size, size), dtype=np.float32)
    for i in range(size):
        for t in range(kernel_size):
            j = i + t - pad
            if j < 0:
                j = -j
            if j > size - 1:
                j = 2 * (size - 1) - j
            B[i, j] += k[t]
    return B


def _pse_loss_kernel(recons_ref, orig_ref, w_ref, out_ref, *,
                     total_rows, blocks_per_split):
    c = pl.program_id(0)   # megacore split axis ("parallel")
    i = pl.program_id(1)   # reduction over row blocks ("arbitrary")

    @pl.when(i == 0)
    def _init():
        out_ref[...] = jnp.zeros_like(out_ref)

    tb = recons_ref.shape[0]
    base = (c * blocks_per_split + i) * tb   # intended global index of first row in tile

    # Fully vectorized over the (tb, H*W) tile: diff in f32, weight, lane-reduce per row.
    diff = recons_ref[...].astype(jnp.float32) - orig_ref[...].astype(jnp.float32)
    weighted = diff * w_ref[...]                              # (tb, HW) * (1, HW)
    row_sums = jnp.sum(weighted, axis=1, keepdims=True)       # (tb, 1)

    # Mask padded / clamped rows by their intended global index.  Masking after the
    # per-row reduction is safe because partiality only happens along whole rows
    # (each row is a complete channel image in the flat layout).
    row_ids = base + jax.lax.broadcasted_iota(jnp.int32, (tb, 1), 0)
    row_sums = jnp.where(row_ids < total_rows, row_sums, 0.0)

    # Output block index depends only on `c`, so it stays resident across the
    # reduction axis and acts as the accumulator.  Weight is pre-scaled by 1/(N*H*W),
    # so no finalize step is needed.
    out_ref[...] += jnp.sum(row_sums)


def pse_loss(recons, orig, *, kernel_size=5, sigma=1.0,
             block_bytes=4 << 20, block_rows=None, num_splits=None):
    """PSELoss: GaussianBlur(recons - orig).sum(dim=1).mean() for NCHW inputs."""
    # TODO(synk): torchvision GaussianBlur samples sigma uniformly when given a (min, max)
    # range; only a fixed scalar sigma is implemented here.
    assert recons.shape == orig.shape and recons.ndim == 4
    N, C, H, W = recons.shape
    total = N * C
    HW = H * W
    itemsize = np.dtype(recons.dtype).itemsize

    # Fold blur + sum + mean into one flat weight row: sum_ij(Bh X Bw^T) = u^T X v.
    Bh = _blur_matrix(H, kernel_size, sigma)
    Bw = _blur_matrix(W, kernel_size, sigma)
    u = Bh.sum(axis=0)                                   # (H,)
    v = Bw.sum(axis=0)                                   # (W,)
    inv_count = 1.0 / float(N * H * W)
    wgt = jnp.asarray((np.outer(u, v).reshape(1, HW) * inv_count).astype(np.float32))

    # Lane-dense layout: (N*C, H*W) so the last dim is wide (multiple of 128 typically).
    r2 = recons.reshape(total, HW)
    o2 = orig.reshape(total, HW)

    # Row tile: ~block_bytes per input per grid step, aligned to the sublane packing
    # for the dtype.  Large tiles amortize the ~0.35 us/step overhead and let the DMA
    # hit HBM bandwidth (the kernel is purely memory-bound).
    row_align = {4: 8, 2: 16, 1: 32}.get(itemsize, 8)
    if block_rows is None:
        block_rows = max(row_align, block_bytes // (HW * itemsize))
    tb = int(min(total, int(block_rows)))
    if tb < total:
        tb = max(row_align, (tb // row_align) * row_align)
        tb = min(tb, total)

    num_blocks = (total + tb - 1) // tb

    if num_splits is None:
        # One split per TensorCore; single-TC chips (v5e/v6e) get 1, no wasted steps.
        try:
            num_splits = int(getattr(jax.devices()[0], "num_cores", 1) or 1)
        except Exception:
            num_splits = 1
    splits = int(max(1, min(num_splits, num_blocks)))
    bps = (num_blocks + splits - 1) // splits
    grid = (splits, bps)

    def img_map(c, i):
        # Clamp so over-the-end steps re-read a valid block; the kernel masks them by
        # their *intended* global row index, so nothing is double counted.
        return (jnp.minimum(c * bps + i, num_blocks - 1), 0)

    kernel = functools.partial(
        _pse_loss_kernel, total_rows=total, blocks_per_split=bps)

    # 2 inputs x 2 pipeline buffers per step + weight + output, with headroom.
    vmem_need = 2 * 2 * tb * HW * itemsize + 4 * HW + 2 * splits * 8 * 128 * 4
    vmem_limit = int(min(100 << 20, max(32 << 20, vmem_need + (8 << 20))))

    flops = int(3 * total * HW)                                    # sub, mul, reduce
    bytes_accessed = int(2 * total * HW * itemsize + 4 * HW + splits * 8 * 128 * 4)

    partials = pl.pallas_call(
        kernel,
        out_shape=jax.ShapeDtypeStruct((splits, 8, 128), jnp.float32),
        grid=grid,
        in_specs=[
            pl.BlockSpec((tb, HW), img_map),
            pl.BlockSpec((tb, HW), img_map),
            pl.BlockSpec((1, HW), lambda c, i: (0, 0)),
        ],
        out_specs=pl.BlockSpec((1, 8, 128), lambda c, i: (c, 0, 0)),
        compiler_params=pltpu.CompilerParams(
            dimension_semantics=("parallel", "arbitrary"),
            vmem_limit_bytes=vmem_limit),
        cost_estimate=pl.CostEstimate(
            flops=flops, transcendentals=0, bytes_accessed=bytes_accessed),
    )(r2, o2, wgt)

    # Each split accumulated its (already 1/(N*H*W)-scaled) partial into its (8,128)
    # tile; combine the per-core partials here.
    return jnp.sum(partials[:, 0, 0])


def pse_loss_ref(recons, orig, *, kernel_size, sigma):
    # Pure-JAX reference: reflect-padded separable Gaussian blur on the residual,
    # sum over channels, mean over N*H*W (mirrors the PyTorch module).
    r = recons.astype(jnp.float32) - orig.astype(jnp.float32)   # [N, C, H, W]
    k = jnp.asarray(_gaussian_kernel1d(kernel_size, sigma))
    p = kernel_size // 2
    H, W = r.shape[-2], r.shape[-1]
    rp = jnp.pad(r, ((0, 0), (0, 0), (p, p), (0, 0)), mode="reflect")
    r = sum(k[t] * rp[:, :, t:t + H, :] for t in range(kernel_size))
    rp = jnp.pad(r, ((0, 0), (0, 0), (0, 0), (p, p)), mode="reflect")
    r = sum(k[t] * rp[:, :, :, t:t + W] for t in range(kernel_size))
    return r.sum(axis=1).mean()


if __name__ == "__main__":
    key = jax.random.PRNGKey(0)
    k1, k2, k3, k4, k5, k6 = jax.random.split(key, 6)

    # Case 1: small f32 input, single block, default (device-derived) splits.
    N, C, H, W = 2, 3, 16, 16
    recons = jax.random.normal(k1, (N, C, H, W), dtype=jnp.float32)
    orig = jax.random.normal(k2, (N, C, H, W), dtype=jnp.float32)
    out = jax.block_until_ready(pse_loss(recons, orig, kernel_size=5, sigma=1.2))
    ref = jax.block_until_ready(pse_loss_ref(recons, orig, kernel_size=5, sigma=1.2))
    assert jnp.allclose(out, ref, atol=2e-5, rtol=1e-3), (out, ref)

    # Case 2: bf16 inputs (halves HBM traffic; accumulation stays f32), default tiling.
    recons2 = jax.random.normal(k3, (2, 4, 24, 32), dtype=jnp.bfloat16)
    orig2 = jax.random.normal(k4, (2, 4, 24, 32), dtype=jnp.bfloat16)
    out2 = jax.block_until_ready(pse_loss(recons2, orig2, kernel_size=3, sigma=0.8))
    ref2 = jax.block_until_ready(pse_loss_ref(recons2, orig2, kernel_size=3, sigma=0.8))
    assert jnp.allclose(out2, ref2, atol=1e-4, rtol=1e-3), (out2, ref2)

    # Case 3: forced small row tile + 2 splits -> multiple grid steps, a genuinely
    # partial last block (34 rows, tb=8) and a clamped megacore step, all masked.
    N3, C3, H3, W3 = 2, 17, 16, 16
    recons3 = jax.random.normal(k5, (N3, C3, H3, W3), dtype=jnp.float32)
    orig3 = jax.random.normal(k6, (N3, C3, H3, W3), dtype=jnp.float32)
    out3 = jax.block_until_ready(
        pse_loss(recons3, orig3, kernel_size=5, sigma=1.0, block_rows=8, num_splits=2))
    ref3 = jax.block_until_ready(
        pse_loss_ref(recons3, orig3, kernel_size=5, sigma=1.0))
    assert jnp.allclose(out3, ref3, atol=5e-5, rtol=1e-3), (out3, ref3)

    print("KERNEL_OK")
</pallas_src>

<mosaic_0001>
module attributes {stable_mosaic.version = 11 : i64} {
  func.func @_pse_loss_kernel(%arg0: i32, %arg1: i32, %arg2: memref<6x256xf32, #tpu.memory_space<vmem>>, %arg3: memref<6x256xf32, #tpu.memory_space<vmem>>, %arg4: memref<1x256xf32, #tpu.memory_space<vmem>>, %arg5: memref<1x8x128xf32, #tpu.memory_space<vmem>>) attributes {dimension_semantics = [#tpu.dimension_semantics<parallel>, #tpu.dimension_semantics<arbitrary>], iteration_bounds = array<i64: 1, 1>, scalar_prefetch = 0 : i64, scratch_operands = 0 : i64, tpu.core_type = #tpu.core_type<tc>, window_params = [{transform_indices = @transform_0, window_bounds = array<i64: 6, 256>}, {transform_indices = @transform_1, window_bounds = array<i64: 6, 256>}, {pipeline_mode = #tpu.pipeline_mode<synchronous>, transform_indices = @transform_2, window_bounds = array<i64: 1, 256>}, {transform_indices = @transform_3, window_bounds = array<i64: 1, 8, 128>}]} {
    %c0_i32 = arith.constant 0 : i32
    %0 = arith.cmpi eq, %arg1, %c0_i32 : i32
    %1 = arith.extui %0 : i1 to i32
    %c0_i32_0 = arith.constant 0 : i32
    %2 = arith.cmpi ne, %1, %c0_i32_0 : i32
    scf.if %2 {
      %cst_15 = arith.constant 0.000000e+00 : f32
      %29 = vector.broadcast %cst_15 : f32 to vector<1x8x128xf32>
      %c0_16 = arith.constant 0 : index
      %c0_17 = arith.constant 0 : index
      %c0_18 = arith.constant 0 : index
      %30 = vector.load %arg5[%c0_16, %c0_17, %c0_18] : memref<1x8x128xf32, #tpu.memory_space<vmem>>, vector<1x8x128xf32>
      tpu.vector_store %arg5[%c0_16, %c0_17, %c0_18], %29 {strides = array<i32>} : memref<1x8x128xf32, #tpu.memory_space<vmem>>, vector<1x8x128xf32>,
    } else {
    }
    %c1_i32 = arith.constant 1 : i32
    %3 = arith.muli %arg0, %c1_i32 : i32
    %4 = arith.addi %3, %arg1 : i32
    %c6_i32 = arith.constant 6 : i32
    %5 = arith.muli %4, %c6_i32 : i32
    %c0 = arith.constant 0 : index
    %c0_1 = arith.constant 0 : index
    %6 = vector.load %arg2[%c0, %c0_1] : memref<6x256xf32, #tpu.memory_space<vmem>>, vector<6x256xf32>
    %c0_2 = arith.constant 0 : index
    %c0_3 = arith.constant 0 : index
    %7 = vector.load %arg3[%c0_2, %c0_3] : memref<6x256xf32, #tpu.memory_space<vmem>>, vector<6x256xf32>
    %8 = arith.subf %6, %7 : vector<6x256xf32>
    %c0_4 = arith.constant 0 : index
    %c0_5 = arith.constant 0 : index
    %9 = vector.load %arg4[%c0_4, %c0_5] : memref<1x256xf32, #tpu.memory_space<vmem>>, vector<1x256xf32>
    %10 = vector.broadcast %9 : vector<1x256xf32> to vector<6x256xf32>
    %11 = arith.mulf %8, %10 : vector<6x256xf32>
    %cst = arith.constant dense<0.000000e+00> : vector<6xf32>
    %12 = vector.multi_reduction <add>, %11, %cst [1] : vector<6x256xf32> to vector<6xf32>
    %13 = vector.shape_cast %12 : vector<6xf32> to vector<6x1xf32>
    %14 = tpu.iota {dimensions = array<i32: 0>} : vector<6x1xi32>
    %15 = vector.broadcast %5 : i32 to vector<6x1xi32>
    %16 = arith.addi %15, %14 : vector<6x1xi32>
    %c6_i32_6 = arith.constant 6 : i32
    %17 = vector.broadcast %c6_i32_6 : i32 to vector<6x1xi32>
    %18 = arith.cmpi slt, %16, %17 : vector<6x1xi32>
    %cst_7 = arith.constant 0.000000e+00 : f32
    %19 = vector.broadcast %cst_7 : f32 to vector<6x1xf32>
    %20 = arith.select %18, %13, %19 : vector<6x1xi1>, vector<6x1xf32>
    %c0_8 = arith.constant 0 : index
    %c0_9 = arith.constant 0 : index
    %c0_10 = arith.constant 0 : index
    %21 = vector.load %arg5[%c0_8, %c0_9, %c0_10] : memref<1x8x128xf32, #tpu.memory_space<vmem>>, vector<1x8x128xf32>
    %22 = vector.shape_cast %20 : vector<6x1xf32> to vector<1x6x1xf32>
    %cst_11 = arith.constant dense<0.000000e+00> : vector<1xf32>
    %23 = vector.multi_reduction <add>, %22, %cst_11 [1, 2] : vector<1x6x1xf32> to vector<1xf32>
    %24 = vector.shape_cast %23 : vector<1xf32> to vector<1x1x1xf32>
    %25 = vector.extract %24[0, 0, 0] : f32 from vector<1x1x1xf32>
    %26 = vector.broadcast %25 : f32 to vector<1x8x128xf32>
    %27 = arith.addf %21, %26 : vector<1x8x128xf32>
    %c0_12 = arith.constant 0 : index
    %c0_13 = arith.constant 0 : index
    %c0_14 = arith.constant 0 : index
    %28 = vector.load %arg5[%c0_12, %c0_13, %c0_14] : memref<1x8x128xf32, #tpu.memory_space<vmem>>, vector<1x8x128xf32>
    tpu.vector_store %arg5[%c0_12, %c0_13, %c0_14], %27 {strides = array<i32>} : memref<1x8x128xf32, #tpu.memory_space<vmem>>, vector<1x8x128xf32>,
    return
  }
  func.func @transform_0(%arg0: i32, %arg1: i32) -> (i32, i32) {
    %c1_i32 = arith.constant 1 : i32
    %0 = arith.muli %arg0, %c1_i32 : i32
    %1 = arith.addi %0, %arg1 : i32
    %c0_i32 = arith.constant 0 : i32
    %2 = arith.minsi %1, %c0_i32 : i32
    %c0_i32_0 = arith.constant 0 : i32
    %c0_i32_1 = arith.constant 0 : i32
    return %2, %c0_i32_0 : i32, i32
  }
  func.func @transform_1(%arg0: i32, %arg1: i32) -> (i32, i32) {
    %c1_i32 = arith.constant 1 : i32
    %0 = arith.muli %arg0, %c1_i32 : i32
    %1 = arith.addi %0, %arg1 : i32
    %c0_i32 = arith.constant 0 : i32
    %2 = arith.minsi %1, %c0_i32 : i32
    %c0_i32_0 = arith.constant 0 : i32
    %c0_i32_1 = arith.constant 0 : i32
    return %2, %c0_i32_0 : i32, i32
  }
  func.func @transform_2(%arg0: i32, %arg1: i32) -> (i32, i32) {
    %c0_i32 = arith.constant 0 : i32
    %c0_i32_0 = arith.constant 0 : i32
    %c0_i32_1 = arith.constant 0 : i32
    return %c0_i32, %c0_i32_0 : i32, i32
  }
  func.func @transform_3(%arg0: i32, %arg1: i32) -> (i32, i32, i32) {
    %c0_i32 = arith.constant 0 : i32
    %c0_i32_0 = arith.constant 0 : i32
    %c0_i32_1 = arith.constant 0 : i32
    return %arg0, %c0_i32, %c0_i32_0 : i32, i32, i32
  }
}

</mosaic_0001>

<bundles_post_ra>
// kernel: tpu_custom_call.1
= control target key start
LH: loop header
LB: loop body
LE: loop exit
PB: predicated region body
PF: predicated region fallthrough
CT: control target
= control target key end

     0   :  { %8 = vsyncpa [#allocation3], 0  ;;  %s271_s0 = inlined_call_operand.hbm [shape: f32[6,256], index: 0, kind: input, shape index: {}]   ;;  %s272_s1 = inlined_call_operand.hbm [shape: f32[6,256], index: 1, kind: input, shape index: {}]   ;;  %s273_s2 = inlined_call_operand.vmem [shape: f32[1,256], index: 2, kind: input, shape index: {}]   ;;  %s274_s3 = inlined_call_operand.hbm [shape: f32[1,8,128], index: 3, kind: output, shape index: {}]  }
   0x1   :  { %9 = vsyncpa [#allocation6], 0 }
   0x2   :  { %10 = vsyncpa [#allocation4], 0  ;;  %s209_s12 = smov [#allocation2]   ;;  %s210_s14 = smov [#allocation5]  }
   0x3   :  { %s23_s13 = sshll.u32 %s209_s12, 4  ;;  %s39_s15 = sshll.u32 %s210_s14, 4  ;;  %s24_s13 = int_to_ptr.vmem [resolvable:$true] %s23_s13  ;;  %s40_s15 = int_to_ptr.vmem [resolvable:$true] %s39_s15 }
   0x4   :  { %s137_s18 = scalar_lea.hbm %s271_s0, 256 }
   0x5   :  { %p138_p0 = scmp.ne.s32.totalorder %s271_s0, %s137_s18  ;;  %p141_p1 = scmp.lt.u32.totalorder %s137_s18, %s271_s0 }
   0x7   :  { %p143_p2 = pnand %p141_p1, %p138_p0 }
   0x9   :  { %146 = shalt.err (!%p143_p2)
}
   0xa   :  { %s147_s23 = scalar_lea.vmem %s24_s13, 256  ;;  %p152_p4 = scmp.lt.s32.totalorder %s24_s13, %s24_s13 }
   0xb   :  { %p148_p3 = scmp.ne.s32.totalorder %s24_s13, %s147_s23  ;;  %p153_p5 = scmp.lt.s32.totalorder %s147_s23, %s147_s23 }
   0xd   :  { %p154_p6 = por %p153_p5, %p152_p4 }
   0xf   :  { %p155_p7 = pnand %p154_p6, %p148_p3 }
  0x11   :  { %158 = shalt.err (!%p155_p7)
}
  0x12   :  { %26 = dma.hbm_to_vmem [thread:$0]  %s271_s0, 256, %s24_s13, [#allocation3]  }
  0x13   :  { %s159_s28 = scalar_lea.hbm %s272_s1, 256 }
  0x14   :  { %p160_p8 = scmp.ne.s32.totalorder %s272_s1, %s159_s28  ;;  %p163_p9 = scmp.lt.u32.totalorder %s159_s28, %s272_s1 }
  0x16   :  { %p165_p10 = pnand %p163_p9, %p160_p8 }
  0x18   :  { %168 = shalt.err (!%p165_p10)
}
  0x19   :  { %s169_s6 = scalar_lea.vmem %s40_s15, 256  ;;  %p174_p12 = scmp.lt.s32.totalorder %s40_s15, %s40_s15 }
  0x1a   :  { %p170_p11 = scmp.ne.s32.totalorder %s40_s15, %s169_s6  ;;  %p175_p13 = scmp.lt.s32.totalorder %s169_s6, %s169_s6 }
  0x1c   :  { %p176_p0 = por %p175_p13, %p174_p12 }
  0x1e   :  { %p177_p1 = pnand %p176_p0, %p170_p11 }
  0x20   :  { %180 = shalt.err (!%p177_p1)
}
  0x21   :  { %42 = dma.hbm_to_vmem [thread:$0]  %s272_s1, 256, %s40_s15, [#allocation6]  }
  0x22   :  { %203 = dma.done.wait [#allocation3], 256  }
  0x23   :  { %204 = vsyncadd [#allocation3], 4294967040 }
  0x24   :  { %205 = dma.done.wait [#allocation6], 256  }
  0x25   :  { %206 = vsyncadd [#allocation6], 4294967040  ;;  %v72_v0 = vlaneseq  ;;  %v64_v4 = vld [vmem:[#allocation2] sm:$0x3f]  ;;  %v65_v5 = vld [vmem:[#allocation2 + $0x8] sm:$0x3f] }
  0x26   :  { %v66_v6 = vld [vmem:[#allocation5] sm:$0x3f]  ;;  %v67_v7 = vld [vmem:[#allocation5 + $0x8] sm:$0x3f]  ;;  %v70_v9 = vld [vmem:[%s273_s2] sm:$0x3] }
  0x27   :  { %v73_v1 = vshrl.u32 %v72_v0, 7  ;;  %v68_v8 = vsub.f32 %v64_v4, %v66_v6  ;;  %v69_v10 = vsub.f32 %v65_v5, %v67_v7  ;;  %vm84_vm0 = vcmask 1045504   ;;  %s211_s1 = smov [#allocation7]  }
  0x28   :  { %vm97_vm2 = vcmask 5120   ;;  %s117_s2 = sshll.u32 %s211_s1, 4  ;;  %s118_s2 = int_to_ptr.vmem [resolvable:$true] %s117_s2 }
  0x29   :  { %v74_v2 = vsub.s32 0, %v73_v1  ;;  %v78_v3 = vsub.s32 1, %v73_v1  ;;  %vm94_vm1 = vcmp.lt.s32.totalorder %v73_v1, 6  ;;  %s181_s11 = scalar_lea.vmem %s118_s2, 128  ;;  %p186_p3 = scmp.lt.s32.totalorder %s118_s2, %s118_s2 }
  0x2a   :  { %p182_p2 = scmp.ne.s32.totalorder %s118_s2, %s181_s11  ;;  %p187_p4 = scmp.lt.s32.totalorder %s181_s11, %s181_s11 }
  0x2b   :  { %v75_v11 = vrot.slane %v70_v9, %v74_v2  ;;  %v79_v12 = vrot.slane %v70_v9, %v78_v3 }
  0x2c   :  { %p188_p5 = por %p187_p4, %p186_p3 }
  0x2d   :  { %v82_v13 = vmul.f32 %v75_v11, %v68_v8  ;;  %v83_v14 = vmul.f32 %v79_v12, %v69_v10 }
  0x2e   :  { %p189_p6 = pnand %p188_p5, %p182_p2 }
  0x2f   :  { %v85_v15 = vsel %vm84_vm0, %v82_v13, 0.0  ;;  %v86_v16 = vsel %vm84_vm0, %v83_v14, 0.0 }
  0x30   :  { %v87_v17 = vadd.f32 %v86_v16, %v85_v15 }
  0x32   :  { %88 = vadd.xlane.f32.xlu0 %v87_v17 }
  0xbf   :  { %v89_v18 = vpop.xlane.xlu0 %88 }
  0xc0   :  { %v95_v19 = vsel %vm94_vm1, %v89_v18, 0.0 }
  0xc1   :  { %v98_v20 = vsel %vm97_vm2, %v95_v19, 0.0 }
  0xc2   :  { %99 = vadd.xlane.f32.xlu0 %v98_v20 }
 0x14f   :  { %v100_v21 = vpop.xlane.xlu0 %99 }
 0x150   :  { %v101_v22 = vrot.slane %v100_v21, 4 }
 0x152   :  { %v102_v23 = vadd.f32 %v101_v22, %v100_v21 }
 0x154   :  { %v103_v24 = vrot.slane %v102_v23, 2 }
 0x156   :  { %v104_v25 = vadd.f32 %v103_v24, %v102_v23 }
 0x158   :  { %v105_v26 = vrot.slane %v104_v25, 1 }
 0x15a   :  { %v106_v27 = vadd.f32 %v105_v26, %v104_v25 }
 0x15c   :  { %131 = vpush %v106_v27 }
 0x18d   :  { %s132_s10 = spop %131 }
 0x18e   :  { %v108_v28 = vstv %s132_s10 }
 0x18f   :  { %110 = vst [vmem:[#allocation7] sm:$0xff] %v108_v28 }
 0x190   :  { %192 = shalt.err (!%p189_p6)
}
 0x191   :  { %s193_s14 = scalar_lea.hbm %s274_s3, 128 }
 0x192   :  { %p194_p7 = scmp.ne.s32.totalorder %s274_s3, %s193_s14  ;;  %p197_p8 = scmp.lt.u32.totalorder %s193_s14, %s274_s3 }
 0x194   :  { %p199_p9 = pnand %p197_p8, %p194_p7 }
 0x196   :  { %202 = shalt.err (!%p199_p9)
}
 0x197   :  { %120 = dma.vmem_to_hbm [thread:$0]  %s118_s2, 128, %s274_s3, [#allocation4]  }
 0x198   :  { %207 = dma.done.wait [#allocation4], 128  }
 0x199   :  { %208 = vsyncadd [#allocation4], 4294967168 }
 0x19a   :  { %124 = vsyncpa [#allocation3], 1 }
 0x19b   :  { %125 = vsyncpa [#allocation6], 1 }
 0x19c   :  { %126 = vsyncpa [#allocation4], 1 }

</bundles_post_ra>
